<compile_context>
chip_gen: v5e
topology: v5e:2x2
jax: 0.10.0
libtpu: 0.0.40
codegen_flags: <defaults>
</compile_context>

<pallas_src>
import functools

import jax
import jax.numpy as jnp
from jax import lax
from jax.experimental import pallas as pl
from jax.experimental.pallas import tpu as pltpu


# ----------------------------- MLA kernel -----------------------------

def _mla_block_kernel(x_ref, anw_ref, wqkva_ref, kvnw_ref, wkvb_ref, wo_ref,
                      cos_ref, sin_ref, o_ref, *,
                      nh, nope, rope, vdim, kvr, eps, start_pos):
    """One batch element: x + wo(attention(rope(wq/wkv(attn_norm(x)))))."""
    x = x_ref[0]                                     # (S, D) f32 residual input
    S = x.shape[0]
    half = rope // 2
    qkd = nope + rope
    nq = nh * qkd
    hv = nope + vdim

    # --- attn_norm (f32 statistics) ---
    var = jnp.mean(x * x, axis=-1, keepdims=True)
    h = (x * lax.rsqrt(var + eps)) * anw_ref[...]                # (S, D) f32
    hb = h.astype(jnp.bfloat16)

    # --- one wide projection: [wq * softmax_scale | wkv_a] (bf16 MXU, f32 acc) ---
    proj = jnp.dot(hb, wqkva_ref[...],
                   preferred_element_type=jnp.float32)           # (S, nq + kvr + rope)
    q2 = proj[:, :nq]                                            # scale already folded in
    kv = proj[:, nq:nq + kvr]
    k_pe = proj[:, nq + kvr:]                                    # (S, rope), de-interleaved

    # --- kv_norm + wkv_b as ONE wide matmul ---
    kvar = jnp.mean(kv * kv, axis=-1, keepdims=True)
    kvn = ((kv * lax.rsqrt(kvar + eps)) * kvnw_ref[...]).astype(jnp.bfloat16)
    kvb = jnp.dot(kvn, wkvb_ref[...],
                  preferred_element_type=jnp.float32)            # (S, nh*(nope+vdim))

    # --- head-major reorg: static column slices + leading-axis stacks only ---
    q_nope = jnp.stack([q2[:, i * qkd:i * qkd + nope] for i in range(nh)])       # (nh,S,nope)
    q_pe = jnp.stack([q2[:, i * qkd + nope:(i + 1) * qkd] for i in range(nh)])   # (nh,S,rope)
    k_nope = jnp.stack([kvb[:, i * hv:i * hv + nope] for i in range(nh)])        # (nh,S,nope)
    v = jnp.stack([kvb[:, i * hv + nope:(i + 1) * hv] for i in range(nh)])       # (nh,S,vdim)

    # --- RoPE: split-halves rotation on de-interleaved pe columns ---
    cos = cos_ref[...]                                           # (S, half) f32
    sin = sin_ref[...]
    c3 = cos[None, :, :]
    s3 = sin[None, :, :]
    q_r = q_pe[:, :, :half]
    q_i = q_pe[:, :, half:]
    q_pe = jnp.concatenate([q_r * c3 - q_i * s3, q_r * s3 + q_i * c3], axis=-1)  # (nh,S,rope)
    k_r = k_pe[:, :half]
    k_i = k_pe[:, half:]
    k_pe_rot = jnp.concatenate([k_r * cos - k_i * sin, k_r * sin + k_i * cos],
                               axis=-1)                          # (S, rope)

    # --- scores: per-head nope matmul + ONE flat matmul against the shared k_pe ---
    s_nope = jnp.einsum('hqd,hkd->hqk', q_nope.astype(jnp.bfloat16),
                        k_nope.astype(jnp.bfloat16),
                        preferred_element_type=jnp.float32)      # (nh, S, S)
    s_pe = lax.dot_general(q_pe.reshape(nh * S, rope).astype(jnp.bfloat16),
                           k_pe_rot.astype(jnp.bfloat16),
                           dimension_numbers=(((1,), (1,)), ((), ())),
                           preferred_element_type=jnp.float32)   # (nh*S, S)
    scores = s_nope + s_pe.reshape(nh, S, S)

    # causal mask generated in-kernel (prefill / start_pos == 0 path)
    qpos = lax.broadcasted_iota(jnp.int32, (S, S), 0) + start_pos
    kpos = lax.broadcasted_iota(jnp.int32, (S, S), 1)
    scores = jnp.where((kpos > qpos)[None, :, :], -1e30, scores)

    # --- f32 softmax; normalize AFTER PV (O(nh*S*vdim) instead of O(nh*S^2)) ---
    mx = jnp.max(scores, axis=-1, keepdims=True)
    p = jnp.exp(scores - mx)
    l = jnp.sum(p, axis=-1, keepdims=True)                       # (nh, S, 1)
    o = jnp.einsum('hqk,hkv->hqv', p.astype(jnp.bfloat16), v.astype(jnp.bfloat16),
                   preferred_element_type=jnp.float32)           # (nh, S, vdim)
    o = o * pl.reciprocal(l, approx=True)

    # --- wo: single big-K (nh*vdim) matmul; residual add fused ---
    o_flat = jnp.concatenate([o[i] for i in range(nh)],
                             axis=-1).astype(jnp.bfloat16)       # (S, nh*vdim)
    attn = jnp.dot(o_flat, wo_ref[...],
                   preferred_element_type=jnp.float32)           # (S, D)
    o_ref[0] = x + attn


# ----------------------------- MLP kernel (i-tiled) -----------------------------

def _mlp_block_kernel(x_ref, nw_ref, w13_ref, w2_ref, o_ref, h_sc, *, ti, eps):
    """Grid (B, inter/ti).  Each step consumes one [w1|w3] column tile and one w2 row
    tile; the output block is resident across the i axis and used as the accumulator."""
    i = pl.program_id(1)

    @pl.when(i == 0)
    def _():
        x = x_ref[0]                                             # (S, D) f32
        var = jnp.mean(x * x, axis=-1, keepdims=True)
        h_sc[...] = ((x * lax.rsqrt(var + eps)) * nw_ref[...]).astype(jnp.bfloat16)
        o_ref[0] = x                                             # init accumulator with residual

    h = h_sc[...]                                                # (S, D) bf16, computed once
    h13 = jnp.dot(h, w13_ref[0],
                  preferred_element_type=jnp.float32)            # (S, 2*ti)
    h1 = h13[:, :ti]
    h3 = h13[:, ti:]
    g = (h1 * jax.nn.sigmoid(h1)) * h3                           # silu * gate in f32
    o_ref[0] += jnp.dot(g.astype(jnp.bfloat16), w2_ref[...],
                        preferred_element_type=jnp.float32)


# ----------------------------- wrappers -----------------------------

def _mlp_tile(inter):
    return 128 if inter % 128 == 0 else inter


def mla_block(kp, cfg, x, start_pos, cos, sin):
    B, S, D = x.shape
    nh = cfg['n_heads']
    nope = cfg['qk_nope_head_dim']
    rope = cfg['qk_rope_head_dim']
    vdim = cfg['v_head_dim']
    kvr = cfg['kv_lora_rank']
    qkd = nope + rope
    proj_cols = nh * qkd + kvr + rope
    kernel = functools.partial(
        _mla_block_kernel, nh=nh, nope=nope, rope=rope, vdim=vdim, kvr=kvr,
        eps=1e-6, start_pos=int(start_pos))
    return pl.pallas_call(
        kernel,
        out_shape=jax.ShapeDtypeStruct((B, S, D), jnp.float32),
        grid=(B,),
        in_specs=[
            pl.BlockSpec((1, S, D), lambda b: (b, 0, 0)),
            pl.BlockSpec((1, D), lambda b: (0, 0)),
            pl.BlockSpec((D, proj_cols), lambda b: (0, 0)),
            pl.BlockSpec((1, kvr), lambda b: (0, 0)),
            pl.BlockSpec((kvr, nh * (nope + vdim)), lambda b: (0, 0)),
            pl.BlockSpec((nh * vdim, D), lambda b: (0, 0)),
            pl.BlockSpec((S, rope // 2), lambda b: (0, 0)),
            pl.BlockSpec((S, rope // 2), lambda b: (0, 0)),
        ],
        out_specs=pl.BlockSpec((1, S, D), lambda b: (b, 0, 0)),
        compiler_params=pltpu.CompilerParams(dimension_semantics=("parallel",)),
    )(x, kp['attn_norm_w'], kp['wqkva_t'], kp['kv_norm_w'], kp['wkvb_t'],
      kp['wo_t'], cos, sin)


def mlp_block(kp, cfg, x):
    B, S, D = x.shape
    inter = cfg['inter_dim']
    ti = _mlp_tile(inter)
    n_i = inter // ti
    kernel = functools.partial(_mlp_block_kernel, ti=ti, eps=1e-6)
    return pl.pallas_call(
        kernel,
        out_shape=jax.ShapeDtypeStruct((B, S, D), jnp.float32),
        grid=(B, n_i),
        in_specs=[
            pl.BlockSpec((1, S, D), lambda b, i: (b, 0, 0)),
            pl.BlockSpec((1, D), lambda b, i: (0, 0)),
            pl.BlockSpec((1, D, 2 * ti), lambda b, i: (i, 0, 0)),
            pl.BlockSpec((ti, D), lambda b, i: (i, 0)),
        ],
        out_specs=pl.BlockSpec((1, S, D), lambda b, i: (b, 0, 0)),
        scratch_shapes=[pltpu.VMEM((S, D), jnp.bfloat16)],
        compiler_params=pltpu.CompilerParams(
            dimension_semantics=("parallel", "arbitrary")),
    )(x, kp['ffn_norm_w'], kp['w13_tiled'], kp['w2_t'])


def prepare_block_params(params, cfg):
    """One-time free layout plumbing: transpose to (in, out), fuse wq|wkv_a, fold the
    softmax scale into wq, de-interleave RoPE columns, pack per-i-tile [w1|w3] slabs,
    and cast matmul weights to bf16."""
    nh = cfg['n_heads']
    nope = cfg['qk_nope_head_dim']
    rope = cfg['qk_rope_head_dim']
    vdim = cfg['v_head_dim']
    kvr = cfg['kv_lora_rank']
    D = cfg['dim']
    inter = cfg['inter_dim']
    qkd = nope + rope
    scale = qkd ** (-0.5)            # max_seq_len == original_seq_len path (no mscale)

    # interleaved (re0, im0, ...) -> (re..., im...) permutation applied to BOTH q_pe and
    # k_pe weight columns, so q.k scores (and the block output) are exactly unchanged.
    perm = jnp.concatenate([jnp.arange(0, rope, 2), jnp.arange(1, rope, 2)])

    wq = params['wq'].reshape(nh, qkd, D)                           # (nh, qkd, D)
    wq = jnp.concatenate([wq[:, :nope, :], wq[:, nope:, :][:, perm, :]], axis=1)
    wq = wq * scale                                                 # fold softmax scale
    wq_flat = wq.reshape(nh * qkd, D).T                             # (D, nh*qkd)

    wkva = params['wkv_a']                                          # (kvr+rope, D)
    wkva = jnp.concatenate([wkva[:kvr, :], wkva[kvr:, :][perm, :]], axis=0)
    wqkva_t = jnp.concatenate([wq_flat, wkva.T],
                              axis=1).astype(jnp.bfloat16)          # (D, nh*qkd+kvr+rope)

    wkvb_t = params['wkv_b'].T.astype(jnp.bfloat16)                 # (kvr, nh*(nope+vdim))
    wo_t = params['wo'].T.astype(jnp.bfloat16)                      # (nh*vdim, D)

    ti = _mlp_tile(inter)
    n_i = inter // ti
    w1t = params['w1'].T                                            # (D, inter)
    w3t = params['w3'].T
    w13_tiled = jnp.concatenate(
        [w1t.reshape(D, n_i, ti).transpose(1, 0, 2),
         w3t.reshape(D, n_i, ti).transpose(1, 0, 2)],
        axis=-1).astype(jnp.bfloat16)                               # (n_i, D, 2*ti)
    w2_t = params['w2'].T.astype(jnp.bfloat16)                      # (inter, D)

    return dict(
        attn_norm_w=params['attn_norm_w'].reshape(1, D).astype(jnp.float32),
        ffn_norm_w=params['ffn_norm_w'].reshape(1, D).astype(jnp.float32),
        kv_norm_w=params['kv_norm_w'].reshape(1, kvr).astype(jnp.float32),
        wqkva_t=wqkva_t, wkvb_t=wkvb_t, wo_t=wo_t,
        w13_tiled=w13_tiled, w2_t=w2_t,
    )


# ----------------------------- Block forward -----------------------------

def block_forward(kparams, cfg, x, start_pos, cos, sin):
    # x = x + attn(attn_norm(x), ...)   (fused MLA kernel, residual add in-kernel)
    x = mla_block(kparams, cfg, x, start_pos, cos, sin)
    # x = x + ffn(ffn_norm(x))          (dense MLP layer, i-tiled, residual in-kernel)
    x = mlp_block(kparams, cfg, x)
    return x


# ----------------------------- main -----------------------------

if __name__ == "__main__":
    cfg = dict(dim=64, n_heads=4, qk_nope_head_dim=16, qk_rope_head_dim=8,
               v_head_dim=16, kv_lora_rank=32, inter_dim=256)
    B, S = 2, 8
    start_pos = 0

    key = jax.random.PRNGKey(0)
    ks = jax.random.split(key, 9)

    def w(k, shape, scale=0.05):
        return jax.random.normal(k, shape, jnp.float32) * scale

    nh = cfg['n_heads']
    qkd = cfg['qk_nope_head_dim'] + cfg['qk_rope_head_dim']
    # PyTorch-style parameter shapes: (out_features, in_features)
    params = dict(
        attn_norm_w=jnp.ones((cfg['dim'],), jnp.float32),
        ffn_norm_w=jnp.ones((cfg['dim'],), jnp.float32),
        kv_norm_w=jnp.ones((cfg['kv_lora_rank'],), jnp.float32),
        wq=w(ks[0], (nh * qkd, cfg['dim'])),
        wkv_a=w(ks[1], (cfg['kv_lora_rank'] + cfg['qk_rope_head_dim'], cfg['dim'])),
        wkv_b=w(ks[2], (nh * (cfg['qk_nope_head_dim'] + cfg['v_head_dim']),
                        cfg['kv_lora_rank'])),
        wo=w(ks[3], (cfg['dim'], nh * cfg['v_head_dim'])),
        w1=w(ks[4], (cfg['inter_dim'], cfg['dim'])),
        w2=w(ks[5], (cfg['dim'], cfg['inter_dim'])),
        w3=w(ks[6], (cfg['inter_dim'], cfg['dim'])),
    )
    kparams = prepare_block_params(params, cfg)

    x = jax.random.normal(ks[7], (B, S, cfg['dim']), jnp.float32)

    # freqs_cis (cos/sin of RoPE angles) for positions [start_pos, start_pos+S)
    rope_dim = cfg['qk_rope_head_dim']
    inv_freq = 1.0 / (10000.0 ** (jnp.arange(0, rope_dim, 2, dtype=jnp.float32)
                                  / rope_dim))
    t = jnp.arange(start_pos, start_pos + S, dtype=jnp.float32)
    ang = jnp.outer(t, inv_freq)                  # (S, rope_dim//2)
    cos, sin = jnp.cos(ang), jnp.sin(ang)

    y = block_forward(kparams, cfg, x, start_pos, cos, sin)
    jax.block_until_ready(y)
    assert y.shape == x.shape
    assert bool(jnp.all(jnp.isfinite(y)))
    print("KERNEL_OK")
</pallas_src>

<mosaic_0001>
module attributes {stable_mosaic.version = 11 : i64} {
  func.func @_mla_block_kernel(%arg0: i32, %arg1: memref<1x8x64xf32, #tpu.memory_space<vmem>>, %arg2: memref<1x64xf32, #tpu.memory_space<vmem>>, %arg3: memref<64x136xbf16, #tpu.memory_space<vmem>>, %arg4: memref<1x32xf32, #tpu.memory_space<vmem>>, %arg5: memref<32x128xbf16, #tpu.memory_space<vmem>>, %arg6: memref<64x64xbf16, #tpu.memory_space<vmem>>, %arg7: memref<8x4xf32, #tpu.memory_space<vmem>>, %arg8: memref<8x4xf32, #tpu.memory_space<vmem>>, %arg9: memref<1x8x64xf32, #tpu.memory_space<vmem>>) attributes {dimension_semantics = [#tpu.dimension_semantics<parallel>], iteration_bounds = array<i64: 2>, scalar_prefetch = 0 : i64, scratch_operands = 0 : i64, tpu.core_type = #tpu.core_type<tc>, window_params = [{transform_indices = @transform_0, window_bounds = array<i64: 1, 8, 64>}, {pipeline_mode = #tpu.pipeline_mode<synchronous>, transform_indices = @transform_1, window_bounds = array<i64: 1, 64>}, {pipeline_mode = #tpu.pipeline_mode<synchronous>, transform_indices = @transform_2, window_bounds = array<i64: 64, 136>}, {pipeline_mode = #tpu.pipeline_mode<synchronous>, transform_indices = @transform_3, window_bounds = array<i64: 1, 32>}, {pipeline_mode = #tpu.pipeline_mode<synchronous>, transform_indices = @transform_4, window_bounds = array<i64: 32, 128>}, {pipeline_mode = #tpu.pipeline_mode<synchronous>, transform_indices = @transform_5, window_bounds = array<i64: 64, 64>}, {pipeline_mode = #tpu.pipeline_mode<synchronous>, transform_indices = @transform_6, window_bounds = array<i64: 8, 4>}, {pipeline_mode = #tpu.pipeline_mode<synchronous>, transform_indices = @transform_7, window_bounds = array<i64: 8, 4>}, {transform_indices = @transform_8, window_bounds = array<i64: 1, 8, 64>}]} {
    %c0 = arith.constant 0 : index
    %c0_0 = arith.constant 0 : index
    %c0_1 = arith.constant 0 : index
    %0 = vector.load %arg1[%c0, %c0_0, %c0_1] : memref<1x8x64xf32, #tpu.memory_space<vmem>>, vector<1x8x64xf32>
    %1 = vector.shape_cast %0 : vector<1x8x64xf32> to vector<8x64xf32>
    %2 = arith.mulf %1, %1 : vector<8x64xf32>
    %cst = arith.constant dense<0.000000e+00> : vector<8xf32>
    %3 = vector.multi_reduction <add>, %2, %cst [1] : vector<8x64xf32> to vector<8xf32>
    %4 = vector.shape_cast %3 : vector<8xf32> to vector<8x1xf32>
    %cst_2 = arith.constant 6.400000e+01 : f32
    %5 = vector.broadcast %cst_2 : f32 to vector<8x1xf32>
    %6 = arith.divf %4, %5 : vector<8x1xf32>
    %cst_3 = arith.constant 9.99999997E-7 : f32
    %7 = vector.broadcast %cst_3 : f32 to vector<8x1xf32>
    %8 = arith.addf %6, %7 : vector<8x1xf32>
    %9 = math.rsqrt %8 : vector<8x1xf32>
    %10 = vector.broadcast %9 : vector<8x1xf32> to vector<8x64xf32>
    %11 = arith.mulf %1, %10 : vector<8x64xf32>
    %c0_4 = arith.constant 0 : index
    %c0_5 = arith.constant 0 : index
    %12 = vector.load %arg2[%c0_4, %c0_5] : memref<1x64xf32, #tpu.memory_space<vmem>>, vector<1x64xf32>
    %13 = vector.broadcast %12 : vector<1x64xf32> to vector<8x64xf32>
    %14 = arith.mulf %11, %13 : vector<8x64xf32>
    %15 = arith.truncf %14 : vector<8x64xf32> to vector<8x64xbf16>
    %c0_6 = arith.constant 0 : index
    %c0_7 = arith.constant 0 : index
    %16 = vector.load %arg3[%c0_6, %c0_7] : memref<64x136xbf16, #tpu.memory_space<vmem>>, vector<64x136xbf16>
    %cst_8 = arith.constant dense<0.000000e+00> : vector<8x136xf32>
    %17 = tpu.matmul %15, %16, %cst_8 {dimension_numbers = #tpu.dot_dimension_numbers<[1], [0], [0], [1], [0, 0, 1, 1], [], []>} : vector<8x64xbf16>, vector<64x136xbf16>, vector<8x136xf32> -> vector<8x136xf32>
    %18 = vector.extract_strided_slice %17 {offsets = [0, 0], sizes = [8, 96], strides = [1, 1]} : vector<8x136xf32> to vector<8x96xf32>
    %19 = vector.extract_strided_slice %17 {offsets = [0, 96], sizes = [8, 32], strides = [1, 1]} : vector<8x136xf32> to vector<8x32xf32>
    %20 = vector.extract_strided_slice %17 {offsets = [0, 128], sizes = [8, 8], strides = [1, 1]} : vector<8x136xf32> to vector<8x8xf32>
    %21 = arith.mulf %19, %19 : vector<8x32xf32>
    %cst_9 = arith.constant dense<0.000000e+00> : vector<8xf32>
    %22 = vector.multi_reduction <add>, %21, %cst_9 [1] : vector<8x32xf32> to vector<8xf32>
    %23 = vector.shape_cast %22 : vector<8xf32> to vector<8x1xf32>
    %cst_10 = arith.constant 3.200000e+01 : f32
    %24 = vector.broadcast %cst_10 : f32 to vector<8x1xf32>
    %25 = arith.divf %23, %24 : vector<8x1xf32>
    %cst_11 = arith.constant 9.99999997E-7 : f32
    %26 = vector.broadcast %cst_11 : f32 to vector<8x1xf32>
    %27 = arith.addf %25, %26 : vector<8x1xf32>
    %28 = math.rsqrt %27 : vector<8x1xf32>
    %29 = vector.broadcast %28 : vector<8x1xf32> to vector<8x32xf32>
    %30 = arith.mulf %19, %29 : vector<8x32xf32>
    %c0_12 = arith.constant 0 : index
    %c0_13 = arith.constant 0 : index
    %31 = vector.load %arg4[%c0_12, %c0_13] : memref<1x32xf32, #tpu.memory_space<vmem>>, vector<1x32xf32>
    %32 = vector.broadcast %31 : vector<1x32xf32> to vector<8x32xf32>
    %33 = arith.mulf %30, %32 : vector<8x32xf32>
    %34 = arith.truncf %33 : vector<8x32xf32> to vector<8x32xbf16>
    %c0_14 = arith.constant 0 : index
    %c0_15 = arith.constant 0 : index
    %35 = vector.load %arg5[%c0_14, %c0_15] : memref<32x128xbf16, #tpu.memory_space<vmem>>, vector<32x128xbf16>
    %cst_16 = arith.constant dense<0.000000e+00> : vector<8x128xf32>
    %36 = tpu.matmul %34, %35, %cst_16 {dimension_numbers = #tpu.dot_dimension_numbers<[1], [0], [0], [1], [0, 0, 1, 1], [], []>} : vector<8x32xbf16>, vector<32x128xbf16>, vector<8x128xf32> -> vector<8x128xf32>
    %37 = vector.extract_strided_slice %18 {offsets = [0, 0], sizes = [8, 16], strides = [1, 1]} : vector<8x96xf32> to vector<8x16xf32>
    %38 = vector.extract_strided_slice %18 {offsets = [0, 24], sizes = [8, 16], strides = [1, 1]} : vector<8x96xf32> to vector<8x16xf32>
    %39 = vector.extract_strided_slice %18 {offsets = [0, 48], sizes = [8, 16], strides = [1, 1]} : vector<8x96xf32> to vector<8x16xf32>
    %40 = vector.extract_strided_slice %18 {offsets = [0, 72], sizes = [8, 16], strides = [1, 1]} : vector<8x96xf32> to vector<8x16xf32>
    %41 = vector.shape_cast %37 : vector<8x16xf32> to vector<1x8x16xf32>
    %42 = vector.shape_cast %38 : vector<8x16xf32> to vector<1x8x16xf32>
    %43 = vector.shape_cast %39 : vector<8x16xf32> to vector<1x8x16xf32>
    %44 = vector.shape_cast %40 : vector<8x16xf32> to vector<1x8x16xf32>
    %45 = tpu.concatenate %41, %42, %43, %44 in 0 : vector<1x8x16xf32>, vector<1x8x16xf32>, vector<1x8x16xf32>, vector<1x8x16xf32> -> vector<4x8x16xf32>
    %46 = vector.extract_strided_slice %18 {offsets = [0, 16], sizes = [8, 8], strides = [1, 1]} : vector<8x96xf32> to vector<8x8xf32>
    %47 = vector.extract_strided_slice %18 {offsets = [0, 40], sizes = [8, 8], strides = [1, 1]} : vector<8x96xf32> to vector<8x8xf32>
    %48 = vector.extract_strided_slice %18 {offsets = [0, 64], sizes = [8, 8], strides = [1, 1]} : vector<8x96xf32> to vector<8x8xf32>
    %49 = vector.extract_strided_slice %18 {offsets = [0, 88], sizes = [8, 8], strides = [1, 1]} : vector<8x96xf32> to vector<8x8xf32>
    %50 = vector.shape_cast %46 : vector<8x8xf32> to vector<1x8x8xf32>
    %51 = vector.shape_cast %47 : vector<8x8xf32> to vector<1x8x8xf32>
    %52 = vector.shape_cast %48 : vector<8x8xf32> to vector<1x8x8xf32>
    %53 = vector.shape_cast %49 : vector<8x8xf32> to vector<1x8x8xf32>
    %54 = tpu.concatenate %50, %51, %52, %53 in 0 : vector<1x8x8xf32>, vector<1x8x8xf32>, vector<1x8x8xf32>, vector<1x8x8xf32> -> vector<4x8x8xf32>
    %55 = vector.extract_strided_slice %36 {offsets = [0, 0], sizes = [8, 16], strides = [1, 1]} : vector<8x128xf32> to vector<8x16xf32>
    %56 = vector.extract_strided_slice %36 {offsets = [0, 32], sizes = [8, 16], strides = [1, 1]} : vector<8x128xf32> to vector<8x16xf32>
    %57 = vector.extract_strided_slice %36 {offsets = [0, 64], sizes = [8, 16], strides = [1, 1]} : vector<8x128xf32> to vector<8x16xf32>
    %58 = vector.extract_strided_slice %36 {offsets = [0, 96], sizes = [8, 16], strides = [1, 1]} : vector<8x128xf32> to vector<8x16xf32>
    %59 = vector.shape_cast %55 : vector<8x16xf32> to vector<1x8x16xf32>
    %60 = vector.shape_cast %56 : vector<8x16xf32> to vector<1x8x16xf32>
    %61 = vector.shape_cast %57 : vector<8x16xf32> to vector<1x8x16xf32>
    %62 = vector.shape_cast %58 : vector<8x16xf32> to vector<1x8x16xf32>
    %63 = tpu.concatenate %59, %60, %61, %62 in 0 : vector<1x8x16xf32>, vector<1x8x16xf32>, vector<1x8x16xf32>, vector<1x8x16xf32> -> vector<4x8x16xf32>
    %64 = vector.extract_strided_slice %36 {offsets = [0, 16], sizes = [8, 16], strides = [1, 1]} : vector<8x128xf32> to vector<8x16xf32>
    %65 = vector.extract_strided_slice %36 {offsets = [0, 48], sizes = [8, 16], strides = [1, 1]} : vector<8x128xf32> to vector<8x16xf32>
    %66 = vector.extract_strided_slice %36 {offsets = [0, 80], sizes = [8, 16], strides = [1, 1]} : vector<8x128xf32> to vector<8x16xf32>
    %67 = vector.extract_strided_slice %36 {offsets = [0, 112], sizes = [8, 16], strides = [1, 1]} : vector<8x128xf32> to vector<8x16xf32>
    %68 = vector.shape_cast %64 : vector<8x16xf32> to vector<1x8x16xf32>
    %69 = vector.shape_cast %65 : vector<8x16xf32> to vector<1x8x16xf32>
    %70 = vector.shape_cast %66 : vector<8x16xf32> to vector<1x8x16xf32>
    %71 = vector.shape_cast %67 : vector<8x16xf32> to vector<1x8x16xf32>
    %72 = tpu.concatenate %68, %69, %70, %71 in 0 : vector<1x8x16xf32>, vector<1x8x16xf32>, vector<1x8x16xf32>, vector<1x8x16xf32> -> vector<4x8x16xf32>
    %c0_17 = arith.constant 0 : index
    %c0_18 = arith.constant 0 : index
    %73 = vector.load %arg7[%c0_17, %c0_18] : memref<8x4xf32, #tpu.memory_space<vmem>>, vector<8x4xf32>
    %c0_19 = arith.constant 0 : index
    %c0_20 = arith.constant 0 : index
    %74 = vector.load %arg8[%c0_19, %c0_20] : memref<8x4xf32, #tpu.memory_space<vmem>>, vector<8x4xf32>
    %75 = vector.shape_cast %73 : vector<8x4xf32> to vector<1x8x4xf32>
    %76 = vector.shape_cast %74 : vector<8x4xf32> to vector<1x8x4xf32>
    %77 = vector.extract_strided_slice %54 {offsets = [0, 0, 0], sizes = [4, 8, 4], strides = [1, 1, 1]} : vector<4x8x8xf32> to vector<4x8x4xf32>
    %78 = vector.extract_strided_slice %54 {offsets = [0, 0, 4], sizes = [4, 8, 4], strides = [1, 1, 1]} : vector<4x8x8xf32> to vector<4x8x4xf32>
    %79 = vector.broadcast %75 : vector<1x8x4xf32> to vector<4x8x4xf32>
    %80 = arith.mulf %77, %79 : vector<4x8x4xf32>
    %81 = vector.broadcast %76 : vector<1x8x4xf32> to vector<4x8x4xf32>
    %82 = arith.mulf %78, %81 : vector<4x8x4xf32>
    %83 = arith.subf %80, %82 : vector<4x8x4xf32>
    %84 = vector.broadcast %76 : vector<1x8x4xf32> to vector<4x8x4xf32>
    %85 = arith.mulf %77, %84 : vector<4x8x4xf32>
    %86 = vector.broadcast %75 : vector<1x8x4xf32> to vector<4x8x4xf32>
    %87 = arith.mulf %78, %86 : vector<4x8x4xf32>
    %88 = arith.addf %85, %87 : vector<4x8x4xf32>
    %89 = tpu.concatenate %83, %88 in 2 : vector<4x8x4xf32>, vector<4x8x4xf32> -> vector<4x8x8xf32>
    %90 = vector.extract_strided_slice %20 {offsets = [0, 0], sizes = [8, 4], strides = [1, 1]} : vector<8x8xf32> to vector<8x4xf32>
    %91 = vector.extract_strided_slice %20 {offsets = [0, 4], sizes = [8, 4], strides = [1, 1]} : vector<8x8xf32> to vector<8x4xf32>
    %92 = arith.mulf %90, %73 : vector<8x4xf32>
    %93 = arith.mulf %91, %74 : vector<8x4xf32>
    %94 = arith.subf %92, %93 : vector<8x4xf32>
    %95 = arith.mulf %90, %74 : vector<8x4xf32>
    %96 = arith.mulf %91, %73 : vector<8x4xf32>
    %97 = arith.addf %95, %96 : vector<8x4xf32>
    %98 = tpu.concatenate %94, %97 in 1 : vector<8x4xf32>, vector<8x4xf32> -> vector<8x8xf32>
    %99 = arith.truncf %45 : vector<4x8x16xf32> to vector<4x8x16xbf16>
    %100 = arith.truncf %63 : vector<4x8x16xf32> to vector<4x8x16xbf16>
    "tpu.trace_start"() <{level = 10 : i32, message = "hqd,hkd->hqk"}> : () -> ()
    %cst_21 = arith.constant dense<0.000000e+00> : vector<4x8x8xf32>
    %101 = tpu.matmul %99, %100, %cst_21 {dimension_numbers = #tpu.dot_dimension_numbers<[2], [2], [1], [1], [0, 0, 0, 1, 1, 1], [0], [0]>} : vector<4x8x16xbf16>, vector<4x8x16xbf16>, vector<4x8x8xf32> -> vector<4x8x8xf32>
    "tpu.trace_stop"() : () -> ()
    %102 = vector.shape_cast %89 : vector<4x8x8xf32> to vector<32x8xf32>
    %103 = arith.truncf %102 : vector<32x8xf32> to vector<32x8xbf16>
    %104 = arith.truncf %98 : vector<8x8xf32> to vector<8x8xbf16>
    %cst_22 = arith.constant dense<0.000000e+00> : vector<32x8xf32>
    %105 = tpu.matmul %103, %104, %cst_22 {dimension_numbers = #tpu.dot_dimension_numbers<[1], [1], [0], [0], [0, 0, 1, 0], [], []>} : vector<32x8xbf16>, vector<8x8xbf16>, vector<32x8xf32> -> vector<32x8xf32>
    %106 = vector.shape_cast %105 : vector<32x8xf32> to vector<4x8x8xf32>
    %107 = arith.addf %101, %106 : vector<4x8x8xf32>
    %108 = tpu.iota {dimensions = array<i32: 0>} : vector<8x8xi32>
    %c0_i32 = arith.constant 0 : i32
    %109 = vector.broadcast %c0_i32 : i32 to vector<8x8xi32>
    %110 = arith.addi %108, %109 : vector<8x8xi32>
    %111 = tpu.iota {dimensions = array<i32: 1>} : vector<8x8xi32>
    %112 = arith.cmpi sgt, %111, %110 : vector<8x8xi32>
    %113 = vector.shape_cast %112 : vector<8x8xi1> to vector<1x8x8xi1>
    %cst_23 = arith.constant -1.000000e+30 : f32
    %114 = vector.shape_cast %113 : vector<1x8x8xi1> to vector<1x8x8xi1>
    %115 = vector.broadcast %114 : vector<1x8x8xi1> to vector<4x8x8xi1>
    %116 = vector.broadcast %cst_23 : f32 to vector<4x8x8xf32>
    %117 = arith.select %115, %116, %107 : vector<4x8x8xi1>, vector<4x8x8xf32>
    %cst_24 = arith.constant dense<0xFF800000> : vector<4x8xf32>
    %118 = vector.multi_reduction <maximumf>, %117, %cst_24 [2] : vector<4x8x8xf32> to vector<4x8xf32>
    %119 = vector.shape_cast %118 : vector<4x8xf32> to vector<4x8x1xf32>
    %120 = vector.broadcast %119 : vector<4x8x1xf32> to vector<4x8x8xf32>
    %121 = arith.subf %117, %120 : vector<4x8x8xf32>
    %122 = math.exp %121 : vector<4x8x8xf32>
    %cst_25 = arith.constant dense<0.000000e+00> : vector<4x8xf32>
    %123 = vector.multi_reduction <add>, %122, %cst_25 [2] : vector<4x8x8xf32> to vector<4x8xf32>
    %124 = vector.shape_cast %123 : vector<4x8xf32> to vector<4x8x1xf32>
    %125 = arith.truncf %122 : vector<4x8x8xf32> to vector<4x8x8xbf16>
    %126 = arith.truncf %72 : vector<4x8x16xf32> to vector<4x8x16xbf16>
    "tpu.trace_start"() <{level = 10 : i32, message = "hqk,hkv->hqv"}> : () -> ()
    %cst_26 = arith.constant dense<0.000000e+00> : vector<4x8x16xf32>
    %127 = tpu.matmul %125, %126, %cst_26 {dimension_numbers = #tpu.dot_dimension_numbers<[2], [1], [1], [2], [0, 0, 0, 1, 1, 2], [0], [0]>} : vector<4x8x8xbf16>, vector<4x8x16xbf16>, vector<4x8x16xf32> -> vector<4x8x16xf32>
    "tpu.trace_stop"() : () -> ()
    %128 = tpu.reciprocal %124 {approx = true} : vector<4x8x1xf32> -> vector<4x8x1xf32>
    %129 = vector.broadcast %128 : vector<4x8x1xf32> to vector<4x8x16xf32>
    %130 = arith.mulf %127, %129 : vector<4x8x16xf32>
    %131 = vector.extract_strided_slice %130 {offsets = [0, 0, 0], sizes = [1, 8, 16], strides = [1, 1, 1]} : vector<4x8x16xf32> to vector<1x8x16xf32>
    %132 = vector.shape_cast %131 : vector<1x8x16xf32> to vector<8x16xf32>
    %133 = vector.extract_strided_slice %130 {offsets = [1, 0, 0], sizes = [1, 8, 16], strides = [1, 1, 1]} : vector<4x8x16xf32> to vector<1x8x16xf32>
    %134 = vector.shape_cast %133 : vector<1x8x16xf32> to vector<8x16xf32>
    %135 = vector.extract_strided_slice %130 {offsets = [2, 0, 0], sizes = [1, 8, 16], strides = [1, 1, 1]} : vector<4x8x16xf32> to vector<1x8x16xf32>
    %136 = vector.shape_cast %135 : vector<1x8x16xf32> to vector<8x16xf32>
    %137 = vector.extract_strided_slice %130 {offsets = [3, 0, 0], sizes = [1, 8, 16], strides = [1, 1, 1]} : vector<4x8x16xf32> to vector<1x8x16xf32>
    %138 = vector.shape_cast %137 : vector<1x8x16xf32> to vector<8x16xf32>
    %139 = tpu.concatenate %132, %134, %136, %138 in 1 : vector<8x16xf32>, vector<8x16xf32>, vector<8x16xf32>, vector<8x16xf32> -> vector<8x64xf32>
    %140 = arith.truncf %139 : vector<8x64xf32> to vector<8x64xbf16>
    %c0_27 = arith.constant 0 : index
    %c0_28 = arith.constant 0 : index
    %141 = vector.load %arg6[%c0_27, %c0_28] : memref<64x64xbf16, #tpu.memory_space<vmem>>, vector<64x64xbf16>
    %cst_29 = arith.constant dense<0.000000e+00> : vector<8x64xf32>
    %142 = tpu.matmul %140, %141, %cst_29 {dimension_numbers = #tpu.dot_dimension_numbers<[1], [0], [0], [1], [0, 0, 1, 1], [], []>} : vector<8x64xbf16>, vector<64x64xbf16>, vector<8x64xf32> -> vector<8x64xf32>
    %143 = arith.addf %1, %142 : vector<8x64xf32>
    %c0_30 = arith.constant 0 : index
    %c0_31 = arith.constant 0 : index
    %c0_32 = arith.constant 0 : index
    %144 = vector.load %arg9[%c0_30, %c0_31, %c0_32] : memref<1x8x64xf32, #tpu.memory_space<vmem>>, vector<1x8x64xf32>
    %145 = vector.shape_cast %144 : vector<1x8x64xf32> to vector<8x64xf32>
    %146 = vector.shape_cast %143 : vector<8x64xf32> to vector<1x8x64xf32>
    tpu.vector_store %arg9[%c0_30, %c0_31, %c0_32], %146 {strides = array<i32>} : memref<1x8x64xf32, #tpu.memory_space<vmem>>, vector<1x8x64xf32>,
    return
  }
  func.func @transform_0(%arg0: i32) -> (i32, i32, i32) {
    %c0_i32 = arith.constant 0 : i32
    %c0_i32_0 = arith.constant 0 : i32
    %c0_i32_1 = arith.constant 0 : i32
    return %arg0, %c0_i32, %c0_i32_0 : i32, i32, i32
  }
  func.func @transform_1(%arg0: i32) -> (i32, i32) {
    %c0_i32 = arith.constant 0 : i32
    %c0_i32_0 = arith.constant 0 : i32
    %c0_i32_1 = arith.constant 0 : i32
    return %c0_i32, %c0_i32_0 : i32, i32
  }
  func.func @transform_2(%arg0: i32) -> (i32, i32) {
    %c0_i32 = arith.constant 0 : i32
    %c0_i32_0 = arith.constant 0 : i32
    %c0_i32_1 = arith.constant 0 : i32
    return %c0_i32, %c0_i32_0 : i32, i32
  }
  func.func @transform_3(%arg0: i32) -> (i32, i32) {
    %c0_i32 = arith.constant 0 : i32
    %c0_i32_0 = arith.constant 0 : i32
    %c0_i32_1 = arith.constant 0 : i32
    return %c0_i32, %c0_i32_0 : i32, i32
  }
  func.func @transform_4(%arg0: i32) -> (i32, i32) {
    %c0_i32 = arith.constant 0 : i32
    %c0_i32_0 = arith.constant 0 : i32
    %c0_i32_1 = arith.constant 0 : i32
    return %c0_i32, %c0_i32_0 : i32, i32
  }
  func.func @transform_5(%arg0: i32) -> (i32, i32) {
    %c0_i32 = arith.constant 0 : i32
    %c0_i32_0 = arith.constant 0 : i32
    %c0_i32_1 = arith.constant 0 : i32
    return %c0_i32, %c0_i32_0 : i32, i32
  }
  func.func @transform_6(%arg0: i32) -> (i32, i32) {
    %c0_i32 = arith.constant 0 : i32
    %c0_i32_0 = arith.constant 0 : i32
    %c0_i32_1 = arith.constant 0 : i32
    return %c0_i32, %c0_i32_0 : i32, i32
  }
  func.func @transform_7(%arg0: i32) -> (i32, i32) {
    %c0_i32 = arith.constant 0 : i32
    %c0_i32_0 = arith.constant 0 : i32
    %c0_i32_1 = arith.constant 0 : i32
    return %c0_i32, %c0_i32_0 : i32, i32
  }
  func.func @transform_8(%arg0: i32) -> (i32, i32, i32) {
    %c0_i32 = arith.constant 0 : i32
    %c0_i32_0 = arith.constant 0 : i32
    %c0_i32_1 = arith.constant 0 : i32
    return %arg0, %c0_i32, %c0_i32_0 : i32, i32, i32
  }
}

</mosaic_0001>

<bundles_post_ra>
// kernel: tpu_custom_call.1
= control target key start
LH: loop header
LB: loop body
LE: loop exit
PB: predicated region body
PF: predicated region fallthrough
CT: control target
= control target key end

     0   :  { %s1893_s0 = inlined_call_operand.vmem [shape: f32[2,8,64], index: 0, kind: input, shape index: {}]   ;;  %s1894_s1 = inlined_call_operand.vmem [shape: f32[1,64], index: 1, kind: input, shape index: {}]   ;;  %s1895_s2 = inlined_call_operand.hbm [shape: bf16[64,136], index: 2, kind: input, shape index: {}]   ;;  %s1896_s3 = inlined_call_operand.vmem [shape: f32[1,32], index: 3, kind: input, shape index: {}]   ;;  %s1897_s4 = inlined_call_operand.hbm [shape: bf16[32,128], index: 4, kind: input, shape index: {}]   ;;  %s1898_s5 = inlined_call_operand.hbm [shape: bf16[64,64], index: 5, kind: input, shape index: {}]   ;;  %s1899_s6 = inlined_call_operand.vmem [shape: f32[8,4], index: 6, kind: input, shape index: {}]   ;;  %s1900_s7 = inlined_call_operand.vmem [shape: f32[8,4], index: 7, kind: input, shape index: {}]   ;;  %s1901_s8 = inlined_call_operand.hbm [shape: f32[2,8,64], index: 8, kind: output, shape index: {}]  }
   0x1   :  { %1902 = sst [smem:[#allocation13_spill]] %s1895_s2 }
   0x2   :  { %1903 = sst [smem:[#allocation14_spill]] %s1897_s4 }
   0x3   :  { %13 = vsyncpa [#allocation3], 0 }
   0x4   :  { %14 = vsyncpa [#allocation6], 0 }
   0x5   :  { %15 = vsyncpa [#allocation4], 0 }
   0x6   :  { %17 = vsyncpa [#allocation4 + $0x1], 0  ;;  %s1597_s27 = smov 0   ;;  %s1599_s28 = smov 0  }
   0x7   :  { %s1601_s29 = smov 0   ;;  %s1603_s30 = smov 0  }
   0x8 LB: > { %s1618_s9 = sadd.s32 4294967295, %s1528_s30   ;;  %s1133_s10 = sadd.s32 4294967294, %s1528_s30   ;;  %s1528_s30 = sphi %s1603_s30, %s1915_s30   ;;  %s1524_s29 = sphi %s1601_s29, %s1914_s29   ;;  %s1520_s28 = sphi %s1599_s28, %s1913_s28   ;;  %s1516_s27 = sphi %s1597_s27, %s1912_s27  }
   0x9   : > { %s1622_s11 = sadd.s32 1, %s1528_s30   ;;  %s203_s12 = sadd.s32 1, %s1524_s29 }
   0xa   : > { %s200_s13 = ssub.s32 %s1528_s30, %s1622_s11  ;;  %p213_p0 = scmp.ne.s32.totalorder %s1524_s29, %s1520_s28 }
   0xb   : > { %p201_p1 = scmp.eq.s32.totalorder %s200_s13, 0  ;;  %p214_p2 = scmp.eq.s32.totalorder %s1618_s9, 1 }
   0xc   : > { %p219_p3 = scmp.ne.s32.totalorder %s1520_s28, %s1516_s27  ;;  %p220_p4 = scmp.eq.s32.totalorder %s1133_s10, 1 }
   0xd   : > { %s1633_s14 = scalar_select %p201_p1, %s1524_s29, %s203_s12  }
   0xe   : > { %p1635_p5 = por %p214_p2, %p213_p0  ;;  %p1639_p6 = por %p220_p4, %p219_p3 }
   0xf   : > { %1904 = sst [smem:[#allocation12_spill]] %s1633_s14  ;;  %p1134_p7 = scmp.ge.s32.totalorder %s1528_s30, 1 }
  0x10   : > { %p227_p8 = scmp.lt.s32.totalorder %s1528_s30, 3  ;;  %p1261_p9 = scmp.eq.s32.totalorder %s1618_s9, 0 }
  0x11   : > { %s1908_s4 = sld [smem:[#allocation14_spill]]  ;;  %s1530_s21 = smov [#allocation5]  }
  0x12   : > { %p1646_p10 = pnand %p1134_p7, %p227_p8  ;;  %s260_s22 = sshll.u32 %s1530_s21, 4  ;;  %s261_s22 = int_to_ptr.vmem [resolvable:$true] %s260_s22 }
  0x13   : > { %s1910_s2 = sld [smem:[#allocation13_spill]]  ;;  %s1531_s10 = smov 64  }
  0x14   : > { %p1247_p11 = pneg %p1646_p10  ;;  %s1532_s12 = smov 4  }
  0x15   : > { %s1533_s13 = smov [#allocation2]   ;;  %s1534_s19 = smov 128  }
  0x16   : > { %p1657_p12 = pnand %p1261_p9, %p1247_p11  ;;  %s243_s18 = sshll.u32 %s1533_s13, 4  ;;  %s244_s18 = int_to_ptr.vmem [resolvable:$true] %s243_s18 }
  0x17   : > { %s258_s20 = sshll.u32 %s1908_s4, 4  ;;  %s1535_s21 = smov 8   ;;  %s259_s20 = int_to_ptr.hbm [resolvable:$true] %s258_s20 }
  0x18   : > { %1253 = dma.hbm_to_vmem [thread:$0]  (!%p1657_p12), %s259_s20, 256, %s261_s22, [#allocation6], %s1531_s10, %s1531_s10, %s1532_s12  }
  0x19   : > { %s241_s26 = sshll.u32 %s1910_s2, 4  ;;  %s272_s24 = sshll.u32 %s1898_s5, 4  ;;  %s242_s26 = int_to_ptr.hbm [resolvable:$true] %s241_s26  ;;  %s273_s24 = int_to_ptr.hbm [resolvable:$true] %s272_s24 }
  0x1a   : > { %1250 = dma.hbm_to_vmem [thread:$0]  (!%p1657_p12), %s242_s26, 1024, %s244_s18, [#allocation3], %s1534_s19, %s1534_s19, %s1535_s21  }
  0x1b   : > { %s1536_s25 = smov [#allocation7]   ;;  %303 = sbr.rel (%p1646_p10) target bundleno = 1624 (0x658), region = 52 }
  0x1c   : > { %s274_s2 = sshll.u32 %s1536_s25, 4  ;;  %s275_s2 = int_to_ptr.vmem [resolvable:$true] %s274_s2 }
  0x1d   : > { %1256 = dma.hbm_to_vmem [thread:$0]  (!%p1657_p12), %s273_s24, 512, %s275_s2, [#allocation6], %s1531_s10, %s1531_s10, %s1532_s12  }
  0x20   : > { %1503 = dma.done.wait (%p1261_p9), [#allocation3], 1024  }
  0x21   : > { %1505 = vsyncadd (%p1261_p9), [#allocation3], 4294966272 }
  0x22   : > { %1507 = dma.done.wait (%p1261_p9), [#allocation6], 768  }
  0x23   : > { %1509 = vsyncadd (%p1261_p9), [#allocation6], 4294966528  ;;  %p347_p13 = scmp.lt.s32.totalorder %s1618_s9, 1  ;;  %vm354_vm0 = vcmask 523264   ;;  %v1537_v3 = vmov 64.0   ;;  %s1538_s26 = smov 32  }
  0x24   : > { %1344 = vrcp.f32 %v1537_v3  ;;  %v1171_v5 = vld [vmem:[#allocation2 + $0x30] sm:$0xf]  ;;  %v1226_v6 = vld [vmem:[#allocation2 + $0x34] sm:$0xf0]  ;;  %v1225_v7 = vld [vmem:[#allocation2 + $0x34] sm:$0xf] }
  0x25   : > { %s348_s4 = scalar_select %p347_p13, %s1618_s9, 1  ;;  %v1172_v8 = vor.u32 %v1226_v6, %v1171_v5  ;;  %v1173_v9 = vld [vmem:[#allocation2 + $0x38] sm:$0xf0]  ;;  %v1163_v12 = vld [vmem:[#allocation2 + $0x20] sm:$0xf]  ;;  %vm466_vm5 = vcmask 261120  }
  0x26   : > { %v1176_v10 = vor.u32 %v1225_v7, %v1173_v9  ;;  %v1224_v13 = vld [vmem:[#allocation2 + $0x24] sm:$0xf0]  ;;  %v1223_v14 = vld [vmem:[#allocation2 + $0x24] sm:$0xf]  ;;  %v1165_v16 = vld [vmem:[#allocation2 + $0x28] sm:$0xf0] }
  0x27   : > { %s1144_s2 = sshll.u32 %s348_s4, 3  ;;  %439 = vmatpush.bf16.msra.mxu0 %v1172_v8  ;;  %v1164_v15 = vor.u32 %v1224_v13, %v1163_v12  ;;  %v1168_v17 = vor.u32 %v1223_v14, %v1165_v16  ;;  %v1155_v19 = vld [vmem:[#allocation2 + $0x10] sm:$0xf]  ;;  %v1222_v20 = vld [vmem:[#allocation2 + $0x14] sm:$0xf0]  ;;  %v1709_v53 = vld [vmem:[%s1899_s6] sm:$0xff] }
  0x28   : > { %s350_s20 = scalar_lea.vmem %s1893_s0, %s1144_s2  ;;  %452 = vmatpush.bf16.msra.mxu1 %v1176_v10  ;;  %v1221_v21 = vld [vmem:[#allocation2 + $0x14] sm:$0xf]  ;;  %v1156_v22 = vor.u32 %v1222_v20, %v1155_v19  ;;  %v1157_v23 = vld [vmem:[#allocation2 + $0x18] sm:$0xf0]  ;;  %v1147_v24 = vld [vmem:[#allocation2] sm:$0xf] }
  0x29   : > { %v1688_v0 = vld [vmem:[%s350_s20] sm:$0xff]  ;;  %v1220_v25 = vld [vmem:[#allocation2 + $0x4] sm:$0xf0]  ;;  %v1160_v26 = vor.u32 %v1221_v21, %v1157_v23  ;;  %v1149_v28 = vld [vmem:[#allocation2 + $0x8] sm:$0xf0]  ;;  %s1539_s13 = smov 20  }
  0x2a   : > { %v353_v1 = vmul.f32 %v1688_v0, %v1688_v0  ;;  %v1345_v4 = vpop.eup %1344  ;;  %v1219_v27 = vld [vmem:[#allocation2 + $0x4] sm:$0xf]  ;;  %v1148_v30 = vor.u32 %v1220_v25, %v1147_v24  ;;  %v1342_v43 = vld [vmem:[%s1894_s1] ss:$0 sm:$0xff]  ;;  %s1540_s21 = smov 4   ;;  %s1541_s24 = smov 16  }
  0x2b   : > { %v359_v11 = vmul.f32 64.0, %v1345_v4  ;;  %440 = vmatpush.bf16.msra.mxu0 %v1164_v15  ;;  %v1152_v31 = vor.u32 %v1219_v27, %v1149_v28  ;;  %vm363_vm1 = vweird.f32 %v1345_v4  ;;  %v1716_v54 = vld [vmem:[%s1900_s7] sm:$0xff]  ;;  %s1542_s25 = smov 124   ;;  %s1543_s14 = smov 96   ;;  %v1545_v60 = vmov 32.0  }
  0x2c   : > { %v355_v2 = vsel %vm354_vm0, %v353_v1, 0.0  ;;  %453 = vmatpush.bf16.msra.mxu1 %v1168_v17  ;;  %v1343_v59 = vld [vmem:[%s1896_s3] ss:$0 sm:$0xff]  ;;  %s1544_s17 = smov 56   ;;  %s1546_s20 = smov 104   ;;  %vm727_vm10 = vcmask 130048  }
  0x2d   : > { %356 = vadd.xlane.f32.xlu0 %v355_v2  ;;  %v360_v18 = vsub.f32 1.0, %v359_v11  ;;  %v1227_v19 = vld [vmem:[#allocation5] sm:$0xff]  ;;  %s1547_s22 = smov 80   ;;  %s1548_s23 = smov 116   ;;  %vm657_vm11 = vcmask 31744   ;;  %vm698_vm12 = vcmask 64512  }
  0x2e   : > { %s1549_s10 = smov 112   ;;  %s1550_s12 = smov 64   ;;  %vm863_vm14 = vcmask 1043456   ;;  %vm974_vm15 = vcmask 392192  }
  0x2f   : > { %v361_v29 = vmul.f32 %v1345_v4, %v360_v18  ;;  %441 = vmatpush.bf16.msra.mxu0 %v1156_v22  ;;  %v1228_v18 = vld [vmem:[#allocation5 + $0x8] sm:$0xff]  ;;  %s1216_s18 = sshll.u32 %s1618_s9, 3 }
  0x30   : > { %454 = vmatpush.bf16.msra.mxu1 %v1160_v26  ;;  %526 = vmatpush.bf16.msra.mxu2 %v1228_v18 }
  0x31   : > { %v362_v32 = vadd.f32 %v1345_v4, %v361_v29 }
  0x33   : > { %442 = vmatpush.bf16.msra.mxu0 %v1148_v30  ;;  %v364_v33 = vsel %vm363_vm1, %v1345_v4, %v362_v32 }
  0x34   : > { %455 = vmatpush.bf16.msra.mxu1 %v1152_v31  ;;  %527 = vmatpush.bf16.msra.mxu2 %v1227_v19 }
  0xa0   : > { %v357_v34 = vpop.xlane.xlu0 %356 }
  0xa1   : > { %v365_v35 = vmul.f32 %v364_v33, %v357_v34 }
  0xa3   : > { %v366_v36 = vadd.f32 1e-06, %v365_v35 }
  0xa5   : > { %1346 = vrsqrt.f32 %v366_v36  ;;  %vm373_vm3 = vweird.f32 %v366_v36 }
  0xa6   : > { %1348 = vrcp.f32 %v1545_v60 }
  0xab   : > { %v1347_v37 = vpop.eup %1346 }
  0xac   : > { %v368_v38 = vmul.f32 %v1347_v37, %v366_v36  ;;  %vm374_vm2 = vweird.f32 %v1347_v37  ;;  %v1349_v61 = vpop.eup %1348 }
  0xad   : > { %vm375_vm4 = vmor %vm373_vm3, %vm374_vm2  ;;  %v471_v62 = vmul.f32 32.0, %v1349_v61  ;;  %vm475_vm6 = vweird.f32 %v1349_v61 }
  0xae   : > { %v369_v39 = vmul.f32 %v1347_v37, %v368_v38 }
  0xaf   : > { %v472_v63 = vsub.f32 1.0, %v471_v62 }
  0xb0   : > { %v370_v40 = vmul.f32 0.5, %v369_v39 }
  0xb1   : > { %v473_v1 = vmul.f32 %v1349_v61, %v472_v63 }
  0xb2   : > { %v371_v41 = vsub.f32 1.5, %v370_v40 }
  0xb3   : > { %v474_v2 = vadd.f32 %v1349_v61, %v473_v1 }
  0xb4   : > { %v372_v42 = vmul.f32 %v1347_v37, %v371_v41 }
  0xb5   : > { %v476_v3 = vsel %vm475_vm6, %v1349_v61, %v474_v2 }
  0xb6   : > { %v376_v44 = vsel %vm375_vm4, %v1347_v37, %v372_v42 }
  0xb7   : > { %v377_v45 = vmul.f32 %v376_v44, %v1688_v0 }
  0xb9   : > { %v382_v46 = vmul.f32 %v1342_v43, %v377_v45 }
  0xbb   : > { %v383_v47 = vpack.c.bf16 %v382_v46, %v382_v46 }
  0xbd   : > { %1177 = vmatmul.msk.bf16.vlgmr.msra.gmra.mxu0 %vm354_vm0, %v383_v47  ;;  %1178 = vmatmul.msk.bf16.vlgmr.msra.gmra.mxu1 %vm354_vm0, %v383_v47 }
 0x13a   : > { %v1699_v48 = vpop.f32.mrf.mxu0  ;;  %v1701_v49 = vpop.f32.mrf.mxu1 }
 0x13b   : > { %v461_v50 = vmul.f32 %v1699_v48, %v1699_v48  ;;  %v672_v36 = vmul.f32 %v1716_v54, %v1701_v49 }
 0x13d   : > { %463 = vrot.lane.b32.xlu0 %v461_v50, %s1538_s26 }
 0x142   : > { %v446_v51 = vpop.f32.mrf.mxu0  ;;  %v459_v52 = vpop.f32.mrf.mxu1 }
 0x145   : > { %598 = vrot.lane.b32.xlu0 %v1709_v53, %s1539_s13 }
 0x14d   : > { %663 = vrot.lane.b32.xlu0 %v1716_v54, %s1540_s21 }
 0x155   : > { %591 = vrot.lane.b32.xlu0 %v1716_v54, %s1541_s24 }
 0x1af   : > { %v464_v55 = vpop.permute.xlu0 %463 }
 0x1b0   : > { %v467_v56 = vsel %vm466_vm5, %v464_v55, 0.0 }
 0x1b1   : > { %468 = vadd.xlane.f32.xlu1 %v467_v56 }
 0x1b7   : > { %v1723_v57 = vpop.permute.xlu0 %598 }
 0x1b8   : > { %v601_v58 = vmul.f32 %v1723_v57, %v1699_v48 }
 0x1ba   : > { %609 = vrot.lane.b32.xlu0 %v601_v58, %s1542_s25 }
 0x1bf   : > { %v664_v29 = vpop.permute.xlu0 %663 }
 0x1c0   : > { %v666_v33 = vmul.f32 %v664_v29, %v1701_v49 }
 0x1c7   : > { %v592_v39 = vpop.permute.xlu0 %591 }
 0x1c8   : > { %v594_v42 = vmul.f32 %v592_v39, %v1699_v48 }
 0x1ca   : > { %493 = vrot.lane.b32.xlu1 %v1343_v59, %s1543_s14  ;;  %v687_v59 = vpack.c.bf16 %v1699_v48, %v1699_v48 }
 0x1d2   : > { %540 = vrot.lane.b32.xlu1 %v1699_v48, %s1544_s17 }
 0x1da   : > { %556 = vrot.lane.b32.xlu1 %v1709_v53, %s1541_s24 }
 0x224   : > { %v469_v4 = vpop.xlane.xlu1 %468 }
 0x225   : > { %v477_v5 = vmul.f32 %v476_v3, %v469_v4 }
 0x227   : > { %v478_v6 = vadd.f32 1e-06, %v477_v5 }
 0x229   : > { %1350 = vrsqrt.f32 %v478_v6  ;;  %vm485_vm8 = vweird.f32 %v478_v6 }
 0x22c   : > { %v610_v41 = vpop.permute.xlu0 %609 }
 0x22d   : > { %v621_v45 = vadd.f32 %v610_v41, %v594_v42 }
 0x22f   : > { %v1351_v7 = vpop.eup %1350 }
 0x230   : > { %v480_v8 = vmul.f32 %v1351_v7, %v478_v6  ;;  %vm486_vm7 = vweird.f32 %v1351_v7 }
 0x231   : > { %vm487_vm9 = vmor %vm485_vm8, %vm486_vm7 }
 0x232   : > { %v481_v9 = vmul.f32 %v1351_v7, %v480_v8 }
 0x234   : > { %v482_v10 = vmul.f32 0.5, %v481_v9 }
 0x236   : > { %v483_v11 = vsub.f32 1.5, %v482_v10 }
 0x238   : > { %v484_v12 = vmul.f32 %v1351_v7, %v483_v11 }
 0x23a   : > { %v488_v13 = vsel %vm487_vm9, %v1351_v7, %v484_v12 }
 0x23b   : > { %v489_v14 = vmul.f32 %v488_v13, %v1699_v48 }
 0x23c   : > { %v494_v15 = vpop.permute.xlu1 %493 }
 0x23d   : > { %v496_v16 = vmul.f32 %v494_v15, %v489_v14  ;;  %v662_v14 = vmul.f32 %v1709_v53, %v1701_v49 }
 0x23f   : > { %v497_v17 = vpack.c.bf16 %v496_v16, %v496_v16 }
 0x241   : > { %503 = vrot.lane.b32.xlu2 %v497_v17, %s1538_s26 }
 0x244   : > { %v1748_v24 = vpop.permute.xlu1 %540 }
 0x245   : > { %v604_v34 = vmul.f32 %v1723_v57, %v1748_v24  ;;  %v597_v8 = vmul.f32 %v592_v39, %v1748_v24 }
 0x249   : > { %673 = vrot.lane.b32.xlu2 %v1709_v53, %s1540_s21 }
 0x24c   : > { %v557_v51 = vpop.permute.xlu1 %556 }
 0x24d   : > { %v559_v55 = vmul.f32 %v557_v51, %v1699_v48  ;;  %v562_v1 = vmul.f32 %v557_v51, %v1748_v24 }
 0x251   : > { %534 = vrot.lane.b32.xlu2 %v1699_v48, %s1546_s20 }
 0x259   : > { %564 = vrot.lane.b32.xlu2 %v1716_v54, %s1539_s13  ;;  %s1551_s13 = smov 48  }
 0x261   : > { %537 = vrot.lane.b32.xlu2 %v1699_v48, %s1547_s22 }
 0x29b   : > { %v504_v20 = vpop.permute.xlu2 %503 }
 0x29c   : > { %1187 = vmatmul.msk.bf16.vlgmr.msra.gmra.mxu2 %vm466_vm5, %v504_v20 }
 0x2a3   : > { %v674_v21 = vpop.permute.xlu2 %673 }
 0x2a4   : > { %v676_v22 = vmul.f32 %v674_v21, %v1701_v49 }
 0x2a6   : > { %678 = vrot.lane.b32.xlu2 %v676_v22, %s1542_s25 }
 0x2ab   : > { %v1746_v23 = vpop.permute.xlu2 %534 }
 0x2ac   : > { %v602_v32 = vmul.f32 %v1723_v57, %v1746_v23  ;;  %v595_v43 = vmul.f32 %v592_v39, %v1746_v23 }
 0x2b3   : > { %v565_v25 = vpop.permute.xlu2 %564 }
 0x2b4   : > { %v568_v26 = vmul.f32 %v565_v25, %v1746_v23  ;;  %v567_v27 = vmul.f32 %v565_v25, %v1699_v48  ;;  %v570_v28 = vmul.f32 %v565_v25, %v1748_v24 }
 0x2b6   : > { %577 = vrot.lane.b32.xlu1 %v568_v26, %s1542_s25  ;;  %575 = vrot.lane.b32.xlu2 %v567_v27, %s1542_s25 }
 0x2b7   : > { %581 = vrot.lane.b32.xlu0 %v570_v28, %s1542_s25  ;;  %v690_v28 = vpack.c.bf16 %v1748_v24, %v1748_v24 }
 0x2bb   : > { %v1756_v30 = vpop.permute.xlu2 %537 }
 0x2bc   : > { %v569_v31 = vmul.f32 %v565_v25, %v1756_v30  ;;  %v603_v35 = vmul.f32 %v1723_v57, %v1756_v30  ;;  %v560_v57 = vmul.f32 %v557_v51, %v1746_v23  ;;  %v561_v2 = vmul.f32 %v557_v51, %v1756_v30 }
 0x2bd   : > { %v596_v7 = vmul.f32 %v592_v39, %v1756_v30 }
 0x2be   : > { %579 = vrot.lane.b32.xlu1 %v569_v31, %s1542_s25  ;;  %611 = vrot.lane.b32.xlu2 %v602_v32, %s1542_s25  ;;  %v688_v31 = vpack.c.bf16 %v1746_v23, %v1746_v23 }
 0x2bf   : > { %668 = vrot.lane.b32.xlu0 %v666_v33, %s1542_s25 }
 0x2c6   : > { %615 = vrot.lane.b32.xlu1 %v604_v34, %s1542_s25  ;;  %613 = vrot.lane.b32.xlu2 %v603_v35, %s1542_s25  ;;  %s1038_s25 = scalar_lea.hbm %s1901_s8, %s1216_s18 }
 0x300   : > { %v679_v37 = vpop.permute.xlu2 %678 }
 0x301   : > { %v681_v38 = vadd.f32 %v679_v37, %v672_v36 }
 0x303   : > { %683 = vrot.lane.b32.xlu2 %v681_v38, %s1540_s21 }
 0x310   : > { %v576_v40 = vpop.permute.xlu2 %575 }
 0x311   : > { %v587_v60 = vsub.f32 %v559_v55, %v576_v40 }
 0x318   : > { %v612_v44 = vpop.permute.xlu2 %611 }
 0x319   : > { %v622_v46 = vadd.f32 %v612_v44, %v595_v43 }
 0x31b   : > { %v1327_v47 = vpack.i.bf16 %v622_v46, %v621_v45 }
 0x31d   : > { %1328 = vrot.lane.b32.xlu0 %v1327_v47, %s1548_s23 }
 0x31f   : > { %v529_v50 = vpop.f32.mrf.mxu2 }
 0x320   : > { %v1777_v52 = vpack.c.bf16 %v529_v50, %v529_v50  ;;  %v614_v48 = vpop.permute.xlu2 %613 }
 0x321   : > { %v623_v10 = vadd.f32 %v614_v48, %v596_v7 }
 0x322   : > { %v732_v54 = vsel %vm727_vm10, %v1777_v52, 0 }
 0x323   : > { %741 = vmatpush.bf16.xpose.msrb.mxu2 %v732_v54  ;;  %v689_v54 = vpack.c.bf16 %v1756_v30, %v1756_v30 }
 0x325   : > { %550 = vrot.lane.b32.xlu0 %v529_v50, %s1538_s26 }
 0x327   : > { %v531_v56 = vpop.f32.mrf.mxu2 }
 0x328   : > { %v578_v58 = vpop.permute.xlu1 %577  ;;  %v804_v56 = vlaneseq }
 0x329   : > { %v588_v61 = vsub.f32 %v560_v57, %v578_v58  ;;  %v582_v63 = vpop.permute.xlu0 %581 }
 0x32a   : > { %1190 = vmatmul.msk.bf16.vlgmr.msrb.gmra.mxu2 %vm727_vm10, %v687_v59  ;;  %v590_v4 = vsub.f32 %v562_v1, %v582_v63  ;;  %v805_v57 = vshrl.u32 %v804_v56, 7  ;;  %v807_v58 = vand.u32 127, %v804_v56 }
 0x32b   : > { %v1322_v62 = vpack.i.bf16 %v588_v61, %v587_v60 }
 0x32c   : > { %vm808_vm13 = vcmp.gt.s32.totalorder %v807_v58, %v805_v57 }
 0x32d   : > { %1323 = vrot.lane.b32.xlu1 %v1322_v62, %s1549_s10 }
 0x330   : > { %v580_v3 = vpop.permute.xlu1 %579 }
 0x331   : > { %v589_v5 = vsub.f32 %v561_v2, %v580_v3  ;;  %v669_v13 = vpop.permute.xlu0 %668 }
 0x332   : > { %v671_v15 = vsub.f32 %v662_v14, %v669_v13 }
 0x333   : > { %v1332_v6 = vpack.i.bf16 %v590_v4, %v589_v5 }
 0x335   : > { %1333 = vrot.lane.b32.xlu2 %v1332_v6, %s1549_s10 }
 0x338   : > { %v616_v9 = vpop.permute.xlu1 %615 }
 0x339   : > { %v624_v11 = vadd.f32 %v616_v9, %v597_v8 }
 0x33b   : > { %v1337_v12 = vpack.i.bf16 %v624_v11, %v623_v10 }
 0x33d   : > { %1338 = vrot.lane.b32.xlu1 %v1337_v12, %s1548_s23  ;;  %544 = vrot.lane.b32.xlu2 %v529_v50, %s1543_s14  ;;  %s1042_s14 = sshll.u32 %s1038_s25, 4  ;;  %s1043_s14 = int_to_ptr.hbm [resolvable:$true] %s1042_s14 }
 0x33e   : > { %s1472_s20 = sshra.s32 %s1043_s14, 4  ;;  %s1473_s20 = int_to_ptr.hbm [resolvable:$true] %s1472_s20 }
 0x33f   : > { %s1474_s9 = scalar_lea.hbm %s1473_s20, 8  ;;  %p1479_p3 = scmp.lt.s32.totalorder %s1473_s20, %s1901_s8 }
 0x340   : > { %p1475_p0 = scmp.ne.s32.totalorder %s1473_s20, %s1474_s9 }
 0x342   : > { %p1476_p1 = pnand %p1475_p0, %p1635_p5 }
 0x344   : > { %p1477_p2 = pneg %p1476_p1 }
 0x345   : > { %547 = vrot.lane.b32.xlu1 %v529_v50, %s1550_s12 }
 0x35d   : > { %v684_v16 = vpop.permute.xlu2 %683 }
 0x35e   : > { %v686_v17 = vsel %vm657_vm11, %v671_v15, %v684_v16  ;;  %v856_v16 = vunpack.c.l.b16 %v1777_v52 }
 0x35f   : > { %v697_v18 = vpack.c.bf16 %v686_v17, %v686_v17 }
 0x361   : > { %v706_v19 = vsel %vm698_vm12, %v697_v18, 0  ;;  %v857_v18 = vpack.c.b16 %v856_v16, %v856_v16 }
 0x362   : > { %715 = vmatpush.bf16.xpose.msra.mxu3 %v706_v19 }
 0x38f   : > { %v1334_v20 = vpop.permute.xlu2 %1333  ;;  %v1329_v21 = vpop.permute.xlu0 %1328 }
 0x390   : > { %v1331_v32 = vunpack.i.h.bf16 %v1329_v21  ;;  %v1330_v33 = vunpack.i.l.bf16 %v1329_v21  ;;  %v1336_v40 = vunpack.i.h.bf16 %v1334_v20  ;;  %v1335_v41 = vunpack.i.l.bf16 %v1334_v20 }
 0x397   : > { %v545_v22 = vpop.permute.xlu2 %544  ;;  %v551_v25 = vpop.permute.xlu0 %550 }
 0x398   : > { %v1799_v26 = vpack.c.bf16 %v545_v22, %v545_v22  ;;  %v1801_v27 = vpack.c.bf16 %v551_v25, %v551_v25 }
 0x39a   : > { %v789_v49 = vsel %vm727_vm10, %v1801_v27, 0  ;;  %v751_v53 = vsel %vm727_vm10, %v1799_v26, 0  ;;  %v881_v13 = vunpack.c.l.b16 %v1799_v26  ;;  %v929_v17 = vunpack.c.l.b16 %v1801_v27 }
 0x39b   : > { %760 = vmatpush.bf16.xpose.msrb.mxu0 %v751_v53  ;;  %798 = vmatpush.bf16.xpose.msra.mxu2 %v789_v49 }
 0x39c   : > { %v882_v15 = vpack.c.b16 %v881_v13, %v881_v13  ;;  %v930_v19 = vpack.c.b16 %v929_v17, %v929_v17 }
 0x39f   : > { %v1324_v29 = vpop.permute.xlu1 %1323 }
 0x3a0   : > { %v1326_v34 = vunpack.i.h.bf16 %v1324_v29  ;;  %v1325_v35 = vunpack.i.l.bf16 %v1324_v29 }
 0x3a2   : > { %1191 = vmatmul.msk.bf16.vlgmr.msrb.gmra.mxu0 %vm727_vm10, %v688_v31  ;;  %1193 = vmatmul.msk.bf16.vlgmr.msra.gmra.mxu2 %vm727_vm10, %v690_v28  ;;  %v658_v36 = vsel %vm657_vm11, %v1325_v35, %v1330_v33  ;;  %v659_v37 = vsel %vm657_vm11, %v1326_v34, %v1331_v32 }
 0x3a3   : > { %v695_v38 = vpack.c.bf16 %v659_v37, %v658_v36 }
 0x3a5   : > { %1188 = vmatmul.msk.bf16.vlgmr.msra.gmra.mxu3 %vm698_vm12, %v695_v38 }
 0x3ad   : > { %v743_v24 = vpop.f32.mrf.mxu2 }
 0x3af   : > { %v1339_v39 = vpop.permute.xlu1 %1338 }
 0x3b0   : > { %v1341_v23 = vunpack.i.h.bf16 %v1339_v39  ;;  %v1340_v42 = vunpack.i.l.bf16 %v1339_v39 }
 0x3b2   : > { %v660_v43 = vsel %vm657_vm11, %v1335_v41, %v1340_v42  ;;  %v661_v44 = vsel %vm657_vm11, %v1336_v40, %v1341_v23 }
 0x3b3   : > { %v696_v45 = vpack.c.bf16 %v661_v44, %v660_v43 }
 0x3b5   : > { %1189 = vmatmul.msk.bf16.gmra.mxu3 %vm698_vm12, %v696_v45  ;;  %v745_v46 = vpop.f32.mrf.mxu2 }
 0x3b7   : > { %v548_v47 = vpop.permute.xlu1 %547 }
 0x3b8   : > { %v693_v50 = vpack.c.bf16 %v548_v47, %v548_v47 }
 0x3ba   : > { %v770_v51 = vsel %vm727_vm10, %v693_v50, 0  ;;  %v905_v20 = vunpack.c.l.b16 %v693_v50 }
 0x3bb   : > { %779 = vmatpush.bf16.xpose.msrb.mxu1 %v770_v51 }
 0x3bc   : > { %v906_v21 = vpack.c.b16 %v905_v20, %v905_v20 }
 0x3c2   : > { %1192 = vmatmul.msk.bf16.vlgmr.msrb.gmra.mxu1 %vm727_vm10, %v689_v54 }
 0x41f   : > { %v762_v55 = vpop.f32.mrf.mxu0 }
 0x425   : > { %v800_v59 = vpop.f32.mrf.mxu2 }
 0x427   : > { %v764_v60 = vpop.f32.mrf.mxu0 }
 0x428   : > { %v717_v61 = vpop.f32.mrf.mxu3 }
 0x429   : > { %v744_v62 = vadd.f32 %v743_v24, %v717_v61 }
 0x42b   : > { %v1824_v63 = vsel %vm808_vm13, -1e+30, %v744_v62 }
 0x42c   : > { %v815_v22 = vsel %vm698_vm12, %v1824_v63, -inf }
 0x42d   : > { %v802_v1 = vpop.f32.mrf.mxu2 }
 0x430   : > { %v719_v2 = vpop.f32.mrf.mxu3 }
 0x431   : > { %v763_v3 = vadd.f32 %v762_v55, %v719_v2 }
 0x433   : > { %v812_v4 = vsel %vm808_vm13, -1e+30, %v763_v3 }
 0x434   : > { %v818_v30 = vsel %vm698_vm12, %v812_v4, -inf }
 0x435   : > { %819 = vmax.xlane.f32.xlu2 %v818_v30 }
 0x438   : > { %v722_v5 = vpop.f32.mrf.mxu3 }
 0x43f   : > { %v781_v6 = vpop.f32.mrf.mxu1 }
 0x440   : > { %v782_v48 = vadd.f32 %v781_v6, %v722_v5  ;;  %v724_v7 = vpop.f32.mrf.mxu3 }
 0x441   : > { %v801_v8 = vadd.f32 %v800_v59, %v724_v7 }
 0x442   : > { %v813_v9 = vsel %vm808_vm13, -1e+30, %v782_v48 }
 0x443   : > { %v821_v10 = vsel %vm698_vm12, %v813_v9, -inf  ;;  %v814_v11 = vsel %vm808_vm13, -1e+30, %v801_v8 }
 0x444   : > { %822 = vmax.xlane.f32.xlu1 %v821_v10  ;;  %v824_v12 = vsel %vm698_vm12, %v814_v11, -inf  ;;  %v1231_v10 = vld [vmem:[#allocation7 + $0x10] sm:$0xff] }
 0x445   : > { %825 = vmax.xlane.f32.xlu0 %v824_v12  ;;  %v1229_v12 = vld [vmem:[#allocation7] sm:$0xff] }
 0x447   : > { %v783_v14 = vpop.f32.mrf.mxu1 }
 0x44d   : > { %883 = vrot.lane.b32.xlu2 %v882_v15, %s1549_s10 }
 0x455   : > { %858 = vrot.lane.b32.xlu2 %v857_v18, %s1549_s10 }
 0x459   : > { %931 = vrot.lane.b32.xlu0 %v930_v19, %s1549_s10 }
 0x45d   : > { %907 = vrot.lane.b32.xlu1 %v906_v21, %s1549_s10  ;;  %s1478_s10 = scalar_lea.hbm %s1901_s8, 16 }
 0x45e   : > { %p1480_p4 = scmp.lt.s32.totalorder %s1478_s10, %s1474_s9 }
 0x460   : > { %p1481_p7 = por %p1480_p4, %p1479_p3 }
 0x462   : > { %p1482_p8 = pnand %p1481_p7, %p1477_p2 }
 0x483   : > { %816 = vmax.xlane.f32.xlu0 %v815_v22 }
 0x4a8   : > { %v820_v25 = vpop.xlane.xlu2 %819 }
 0x4a9   : > { %v828_v26 = vsub.f32 %v812_v4, %v820_v25 }
 0x4ab   : > { %v833_v49 = vmul.f32 1.442695, %v828_v26 }
 0x4ad   : > { %1352 = vpow2.f32 %v833_v49 }
 0x4b0   : > { %v884_v52 = vpop.permute.xlu2 %883 }
 0x4b1   : > { %v889_v27 = vsel %vm863_vm14, %v884_v52, 0 }
 0x4b2   : > { %898 = vmatpush.bf16.msra.mxu0 %v889_v27 }
 0x4b3   : > { %v1353_v53 = vpop.eup %1352 }
 0x4b4   : > { %v852_v28 = vpack.c.bf16 %v1353_v53, %v1353_v53  ;;  %v842_v29 = vsel %vm698_vm12, %v1353_v53, 0.0 }
 0x4b5   : > { %843 = vadd.xlane.f32.xlu1 %v842_v29 }
 0x4b6   : > { %1195 = vmatmul.msk.bf16.vlgmr.msra.gmra.mxu0 %vm698_vm12, %v852_v28 }
 0x4b7   : > { %v823_v31 = vpop.xlane.xlu1 %822 }
 0x4b8   : > { %v829_v32 = vsub.f32 %v813_v9, %v823_v31  ;;  %v826_v33 = vpop.xlane.xlu0 %825  ;;  %v859_v34 = vpop.permute.xlu2 %858  ;;  %v1232_v9 = vld [vmem:[#allocation7 + $0x18] sm:$0xff] }
 0x4b9   : > { %v830_v35 = vsub.f32 %v814_v11, %v826_v33  ;;  %v865_v36 = vsel %vm863_vm14, %v859_v34, 0  ;;  %v1230_v11 = vld [vmem:[#allocation7 + $0x8] sm:$0xff] }
 0x4ba   : > { %v835_v37 = vmul.f32 1.442695, %v829_v32  ;;  %874 = vmatpush.bf16.msrb.mxu3 %v865_v36 }
 0x4bb   : > { %v837_v38 = vmul.f32 1.442695, %v830_v35 }
 0x4bc   : > { %1354 = vpow2.f32 %v835_v37 }
 0x4bd   : > { %1356 = vpow2.f32 %v837_v38 }
 0x4be   : > { %1016 = vmatpush.bf16.msra.mxu3 %v1232_v9 }
 0x4c2   : > { %v1355_v24 = vpop.eup %1354  ;;  %1017 = vmatpush.bf16.msra.mxu3 %v1231_v10 }
 0x4c3   : > { %v1357_v39 = vpop.eup %1356  ;;  %v845_v40 = vsel %vm698_vm12, %v1355_v24, 0.0  ;;  %v853_v46 = vpack.c.bf16 %v1355_v24, %v1355_v24 }
 0x4c4   : > { %846 = vadd.xlane.f32.xlu2 %v845_v40  ;;  %v848_v41 = vsel %vm698_vm12, %v1357_v39, 0.0  ;;  %v854_v43 = vpack.c.bf16 %v1357_v39, %v1357_v39 }
 0x4c5   : > { %849 = vadd.xlane.f32.xlu0 %v848_v41 }
 0x4c6   : > { %1018 = vmatpush.bf16.msra.mxu3 %v1230_v11 }
 0x4ca   : > { %1019 = vmatpush.bf16.msra.mxu3 %v1229_v12 }
 0x4cb   : > { %v932_v23 = vpop.permute.xlu0 %931 }
 0x4cc   : > { %v937_v42 = vsel %vm863_vm14, %v932_v23, 0 }
 0x4cd   : > { %946 = vmatpush.bf16.msrb.mxu2 %v937_v42 }
 0x4cf   : > { %v908_v44 = vpop.permute.xlu1 %907 }
 0x4d0   : > { %v913_v45 = vsel %vm863_vm14, %v908_v44, 0  ;;  %1197 = vmatmul.msk.bf16.vlgmr.msrb.gmra.mxu2 %vm698_vm12, %v854_v43 }
 0x4d1   : > { %922 = vmatpush.bf16.msra.mxu1 %v913_v45 }
 0x4d4   : > { %1196 = vmatmul.msk.bf16.vlgmr.msra.gmra.mxu1 %vm698_vm12, %v853_v46 }
 0x4f6   : > { %v817_v47 = vpop.xlane.xlu0 %816 }
 0x4f7   : > { %v827_v50 = vsub.f32 %v1824_v63, %v817_v47 }
 0x4f9   : > { %v831_v51 = vmul.f32 1.442695, %v827_v50 }
 0x4fb   : > { %1358 = vpow2.f32 %v831_v51 }
 0x501   : > { %v1359_v54 = vpop.eup %1358 }
 0x502   : > { %v839_v55 = vsel %vm698_vm12, %v1359_v54, 0.0  ;;  %v851_v56 = vpack.c.bf16 %v1359_v54, %v1359_v54 }
 0x503   : > { %840 = vadd.xlane.f32.xlu0 %v839_v55 }
 0x504   : > { %1194 = vmatmul.msk.bf16.vlgmr.msrb.gmra.mxu3 %vm698_vm12, %v851_v56 }
 0x528   : > { %v844_v57 = vpop.xlane.xlu1 %843 }
 0x529   : > { %1360 = vrcp.f32 %v844_v57 }
 0x52f   : > { %v1361_v58 = vpop.eup %1360 }
 0x533   : > { %v900_v59 = vpop.f32.mrf.mxu0 }
 0x534   : > { %v957_v60 = vmul.f32 %v1361_v58, %v900_v59 }
 0x536   : > { %961 = vrot.lane.b32.xlu1 %v957_v60, %s1541_s24 }
 0x537   : > { %v847_v62 = vpop.xlane.xlu2 %846 }
 0x538   : > { %v850_v1 = vpop.xlane.xlu0 %849  ;;  %1362 = vrcp.f32 %v847_v62 }
 0x539   : > { %1364 = vrcp.f32 %v850_v1 }
 0x53b   : > { %v902_v61 = vpop.f32.mrf.mxu0 }
 0x53e   : > { %v1363_v63 = vpop.eup %1362 }
 0x53f   : > { %v1365_v4 = vpop.eup %1364 }
 0x551   : > { %v924_v2 = vpop.f32.mrf.mxu1 }
 0x552   : > { %v958_v3 = vmul.f32 %v1363_v63, %v924_v2 }
 0x553   : > { %v948_v30 = vpop.f32.mrf.mxu2 }
 0x554   : > { %v959_v5 = vmul.f32 %v1365_v4, %v948_v30  ;;  %965 = vrot.lane.b32.xlu2 %v958_v3, %s1538_s26  ;;  %s344_s26 = sand.u32 1, %s1520_s28  }
 0x555   : > { %s1143_s19 = sshll.u32 %s344_s26, 3  ;;  %s1028_s17 = scalar_lea.sflag [#allocation4], %s344_s26 }
 0x556   : > { %969 = vrot.lane.b32.xlu0 %v959_v5, %s1551_s13  ;;  %s346_s4 = scalar_lea.vmem [#allocation8], %s1143_s19 }
 0x557   : > { %s1040_s2 = sshll.u32 %s346_s4, 4  ;;  %s1041_s2 = int_to_ptr.vmem [resolvable:$true] %s1040_s2 }
 0x559   : > { %v926_v6 = vpop.f32.mrf.mxu1 }
 0x55b   : > { %v950_v48 = vpop.f32.mrf.mxu2 }
 0x576   : > { %v841_v13 = vpop.xlane.xlu0 %840 }
 0x577   : > { %1366 = vrcp.f32 %v841_v13 }
 0x57d   : > { %v1367_v14 = vpop.eup %1366 }
 0x587   : > { %v876_v7 = vpop.f32.mrf.mxu3 }
 0x588   : > { %v956_v16 = vmul.f32 %v1367_v14, %v876_v7 }
 0x58f   : > { %v878_v8 = vpop.f32.mrf.mxu3 }
 0x5a8   : > { %v962_v15 = vpop.permute.xlu1 %961 }
 0x5a9   : > { %v972_v18 = vsel %vm727_vm10, %v956_v16, %v962_v15 }
 0x5ae   : > { %v966_v17 = vpop.permute.xlu2 %965 }
 0x5af   : > { %v973_v19 = vsel %vm466_vm5, %v972_v18, %v966_v17 }
 0x5c8   : > { %v970_v20 = vpop.permute.xlu0 %969 }
 0x5c9   : > { %v975_v21 = vsel %vm974_vm15, %v973_v19, %v970_v20 }
 0x5ca   : > { %v976_v22 = vpack.c.bf16 %v975_v21, %v975_v21 }
 0x5cc   : > { %1214 = vmatmul.msk.bf16.vlgmr.msra.gmra.mxu3 %vm354_vm0, %v976_v22 }
 0x64f   : > { %v1021_v25 = vpop.f32.mrf.mxu3 }
 0x650   : > { %v1025_v26 = vadd.f32 %v1021_v25, %v1688_v0 }
 0x652   : > { %1026 = vst.msk [vmem:[%s346_s4] sm:$0xff] %vm354_vm0, %v1025_v26 }
 0x653   : > { %1485 = shalt.err (!%p1482_p8)
}
 0x654   : > { %1245 = dma.vmem_to_hbm [thread:$0]  (%p1635_p5), %s1041_s2, 128, %s1043_s14, %s1028_s17  }
 0x657   : > { %v1023_v0 = vpop.f32.mrf.mxu3 }
 0x658 PF: > { %p1267_p9 = scmp.ge.s32.totalorder %s1528_s30, 2  ;;  %s1054_s26 = sand.u32 1, %s1516_s27  }
 0x659   : > { %s1055_s18 = scalar_lea.sflag [#allocation4], %s1054_s26 }
 0x65a   : > { %p1258_p10 = pnand %p1267_p9, %p1639_p6 }
 0x65c   : > { %p1259_p11 = pneg %p1258_p10 }
 0x65e   : > { %1511 = dma.done.wait (%p1259_p11), %s1055_s18, 128  }
 0x65f   : > { %1513 = vsyncadd (%p1259_p11), %s1055_s18, 4294967168  ;;  %s1911_s19 = sld [smem:[#allocation12_spill]]  ;;  %p20_p12 = scmp.ge.s32.totalorder %s1622_s11, 4  }
 0x660   : > { %s1912_s27 = smov %s1520_s28  ;;  %s1913_s28 = smov %s1524_s29 }
 0x661   : > { %s1915_s30 = smov %s1622_s11  ;;  %22 = sbr.rel (!%p20_p12) target bundleno = 8 (0x8), region = 100 }
 0x665   : > { %s1914_s29 = smov %s1911_s19 }
 0x666   :  { %1061 = vsyncpa [#allocation3], 1 }
 0x667   :  { %1063 = vsyncpa [#allocation3 + $0x1], 1 }
 0x668   :  { %1064 = vsyncpa [#allocation6], 1 }
 0x669   :  { %1065 = vsyncpa [#allocation4], 1 }
 0x66a   :  { %1067 = vsyncpa [#allocation4 + $0x1], 1 }

</bundles_post_ra>
